<compile_context>
chip_gen: v6e
topology: v6e:2x2x1
jax: 0.10.0
libtpu: 0.0.40
codegen_flags: <defaults>
</compile_context>

<pallas_src>
import jax
import jax.numpy as jnp
from jax.experimental import pallas as pl
from jax.experimental.pallas import tpu as pltpu


def dnn_kernel(x_ref, w1_ref, b1_ref, w2_ref, b2_ref, w3_ref, b3_ref, o_ref):
    # x tile arrives f32 from HBM; cast to bf16 in VMEM (cheap VPU pass) so the
    # MXU runs its native bf16 x bf16 -> f32 path. All bias/activation math is f32.
    xb = x_ref[...].astype(jnp.bfloat16)

    # Layer 1: Linear + Sigmoid
    h = jnp.dot(xb, w1_ref[...], preferred_element_type=jnp.float32) + b1_ref[...]
    h = jax.nn.sigmoid(h)

    # Layer 2: Linear + ReLU
    h = jnp.dot(h.astype(jnp.bfloat16), w2_ref[...],
                preferred_element_type=jnp.float32) + b2_ref[...]
    h = jnp.maximum(h, 0.0)

    # Layer 3 (output): Linear + Tanh
    h = jnp.dot(h.astype(jnp.bfloat16), w3_ref[...],
                preferred_element_type=jnp.float32) + b3_ref[...]
    o_ref[...] = jnp.tanh(h).astype(o_ref.dtype)


def _round_up(a, m):
    return (a + m - 1) // m * m


def _default_pack():
    """Packing factor: 16 on v6e/v7x (memory-bound even with 16x padded FLOPs),
    4 on older / lower-TF/s generations (keeps them on the memory roofline)."""
    try:
        kind = jax.devices()[0].device_kind.lower()
    except Exception:
        return 16
    if any(tag in kind for tag in ("v2", "v3", "v4", "v5")):
        return 4
    return 16


def dnn_forward(x, params, *, tile_rows=None, pack=None,
                vmem_budget_bytes=24 * 1024 * 1024):
    """x: any (batch, ...) array; flattened from dim 1 like nn.Flatten(1)."""
    B = x.shape[0]
    x2 = x.reshape(B, -1)
    n_input = x2.shape[1]
    (w1, b1), (w2, b2), (w3, b3) = params
    h1, h2, out_dim = w1.shape[1], w2.shape[1], w3.shape[1]

    P = _default_pack() if pack is None else int(pack)
    P = max(1, P)

    # Pad only up to a multiple of the packing factor (no full-tile padding; the
    # typical large batch that is already a multiple of P pays nothing).
    B_pad = _round_up(B, P)
    if B_pad != B:
        x2 = jnp.pad(x2, ((0, B_pad - B), (0, 0)))

    Rp = B_pad // P                         # packed rows
    Fin, F1, F2, Fo = P * n_input, P * h1, P * h2, P * out_dim
    xp = x2.reshape(Rp, Fin)                # contiguous -> free reshape, no HBM pass

    # Block-diagonal (P-replicated) weights, cast once to bf16 (tiny, VMEM-resident).
    def bd(w):
        return jnp.kron(jnp.eye(P, dtype=jnp.bfloat16), w.astype(jnp.bfloat16))

    def bt(b):
        return jnp.tile(b.astype(jnp.float32), (1, P))

    w1p, w2p, w3p = bd(w1), bd(w2), bd(w3)
    b1p, b2p, b3p = bt(b1), bt(b2), bt(b3)

    # Tile size from a VMEM budget: per packed row we keep
    #   x f32 (2 pipeline buffers) + bf16 copy + f32 hidden activations (x2 for
    #   pre/post + bf16 recasts) + f32 out (2 buffers).
    row_bytes = (2 * 4 * Fin) + (2 * Fin) + (2 * 4 * F1) + (2 * 4 * F2) + (2 * 4 * Fo)
    if tile_rows is None:
        tb = max(8, (vmem_budget_bytes // max(row_bytes, 1)) // 8 * 8)
    else:
        tb = _round_up(max(int(tile_rows), 8), 8)
    # Keep >=4 grid steps when the batch allows (megacore sharding on v7x),
    # and never make the tile larger than the (rounded-up) data.
    tb = min(tb, max(8, _round_up(pl.cdiv(Rp, 4), 8)))

    grid = (pl.cdiv(Rp, tb),)               # partial last block handled by Pallas
    const = lambda i: (0, 0)                # weights/biases: DMA'd once, VMEM-resident

    out = pl.pallas_call(
        dnn_kernel,
        out_shape=jax.ShapeDtypeStruct((Rp, Fo), jnp.float32),
        grid_spec=pltpu.PrefetchScalarGridSpec(
            num_scalar_prefetch=0,
            grid=grid,
            in_specs=[
                pl.BlockSpec((tb, Fin), lambda i: (i, 0)),  # x tile (pipelined)
                pl.BlockSpec((Fin, F1), const),
                pl.BlockSpec((1, F1), const),
                pl.BlockSpec((F1, F2), const),
                pl.BlockSpec((1, F2), const),
                pl.BlockSpec((F2, Fo), const),
                pl.BlockSpec((1, Fo), const),
            ],
            out_specs=pl.BlockSpec((tb, Fo), lambda i: (i, 0)),
        ),
        compiler_params=pltpu.CompilerParams(
            dimension_semantics=("parallel",),       # megacore sharding on v7x
            vmem_limit_bytes=48 * 1024 * 1024,       # <= v7x physical 64 MiB
        ),
    )(xp, w1p, b1p, w2p, b2p, w3p, b3p)

    # Unpack: (Rp, P*out_dim) row-major is exactly (B_pad, out_dim).
    return out.reshape(B_pad, out_dim)[:B]


def init_linear(key, fan_in, fan_out):
    """Deterministic PyTorch-style init: U(-1/sqrt(fan_in), 1/sqrt(fan_in))."""
    kw, kb = jax.random.split(key)
    bound = 1.0 / jnp.sqrt(jnp.float32(fan_in))
    # stored as (in, out) so the kernel computes x @ W
    w = jax.random.uniform(kw, (fan_in, fan_out), jnp.float32, -bound, bound)
    b = jax.random.uniform(kb, (1, fan_out), jnp.float32, -bound, bound)
    return w, b


def _reference(x, params):
    """Pure-JAX f32 reference with the exact PyTorch DNN semantics."""
    x2 = x.reshape(x.shape[0], -1).astype(jnp.float32)
    (w1, b1), (w2, b2), (w3, b3) = params
    hp = jax.lax.Precision.HIGHEST
    r = jax.nn.sigmoid(jnp.dot(x2, w1, precision=hp) + b1)
    r = jnp.maximum(jnp.dot(r, w2, precision=hp) + b2, 0.0)
    r = jnp.tanh(jnp.dot(r, w3, precision=hp) + b3)
    return r


if __name__ == "__main__":
    key = jax.random.PRNGKey(0)
    k_x, k_x2, k1, k2, k3 = jax.random.split(key, 5)

    # Input: (batch=2, 4, 4, 2) -> flattened feature dim = 32 = n_input
    x = jax.random.normal(k_x, (2, 4, 4, 2), jnp.float32)

    n_input = 4 * 4 * 2
    n_hidden_list = [32, 16, 8]

    params = [
        init_linear(k1, n_input, n_hidden_list[0]),
        init_linear(k2, n_hidden_list[0], n_hidden_list[1]),
        init_linear(k3, n_hidden_list[1], n_hidden_list[2]),
    ]

    # --- small example (single grid step, partial edge block) ---
    out = dnn_forward(x, params)
    out = jax.block_until_ready(out)
    assert out.shape == (2, n_hidden_list[-1])
    ref = _reference(x, params)
    # bf16 MXU operands -> loosened tolerance (accumulation/activations stay f32).
    assert jnp.allclose(out, ref, atol=5e-2, rtol=5e-2), float(
        jnp.max(jnp.abs(out - ref))
    )

    # --- multi-step grid + partial last block + non-multiple batch ---
    xl = jax.random.normal(k_x2, (1000, 4, 4, 2), jnp.float32)
    out_l = jax.block_until_ready(dnn_forward(xl, params, tile_rows=16))
    assert out_l.shape == (1000, n_hidden_list[-1])
    ref_l = _reference(xl, params)
    assert jnp.allclose(out_l, ref_l, atol=5e-2, rtol=5e-2), float(
        jnp.max(jnp.abs(out_l - ref_l))
    )

    print("KERNEL_OK")
</pallas_src>

<mosaic_0001>
module attributes {stable_mosaic.version = 11 : i64} {
  func.func @dnn_kernel(%arg0: i32, %arg1: memref<8x512xf32, #tpu.memory_space<vmem>>, %arg2: memref<512x512xbf16, #tpu.memory_space<vmem>>, %arg3: memref<1x512xf32, #tpu.memory_space<vmem>>, %arg4: memref<512x256xbf16, #tpu.memory_space<vmem>>, %arg5: memref<1x256xf32, #tpu.memory_space<vmem>>, %arg6: memref<256x128xbf16, #tpu.memory_space<vmem>>, %arg7: memref<1x128xf32, #tpu.memory_space<vmem>>, %arg8: memref<8x128xf32, #tpu.memory_space<vmem>>) attributes {dimension_semantics = [#tpu.dimension_semantics<parallel>], iteration_bounds = array<i64: 1>, scalar_prefetch = 0 : i64, scratch_operands = 0 : i64, tpu.core_type = #tpu.core_type<tc>, window_params = [{transform_indices = @transform_0, window_bounds = array<i64: 8, 512>}, {pipeline_mode = #tpu.pipeline_mode<synchronous>, transform_indices = @transform_1, window_bounds = array<i64: 512, 512>}, {pipeline_mode = #tpu.pipeline_mode<synchronous>, transform_indices = @transform_2, window_bounds = array<i64: 1, 512>}, {pipeline_mode = #tpu.pipeline_mode<synchronous>, transform_indices = @transform_3, window_bounds = array<i64: 512, 256>}, {pipeline_mode = #tpu.pipeline_mode<synchronous>, transform_indices = @transform_4, window_bounds = array<i64: 1, 256>}, {pipeline_mode = #tpu.pipeline_mode<synchronous>, transform_indices = @transform_5, window_bounds = array<i64: 256, 128>}, {pipeline_mode = #tpu.pipeline_mode<synchronous>, transform_indices = @transform_6, window_bounds = array<i64: 1, 128>}, {transform_indices = @transform_7, window_bounds = array<i64: 8, 128>}]} {
    %c0 = arith.constant 0 : index
    %c0_0 = arith.constant 0 : index
    %0 = vector.load %arg1[%c0, %c0_0] : memref<8x512xf32, #tpu.memory_space<vmem>>, vector<8x512xf32>
    %1 = arith.truncf %0 : vector<8x512xf32> to vector<8x512xbf16>
    %c0_1 = arith.constant 0 : index
    %c0_2 = arith.constant 0 : index
    %2 = vector.load %arg2[%c0_1, %c0_2] : memref<512x512xbf16, #tpu.memory_space<vmem>>, vector<512x512xbf16>
    %cst = arith.constant dense<0.000000e+00> : vector<8x512xf32>
    %3 = tpu.matmul %1, %2, %cst {dimension_numbers = #tpu.dot_dimension_numbers<[1], [0], [0], [1], [0, 0, 1, 1], [], []>} : vector<8x512xbf16>, vector<512x512xbf16>, vector<8x512xf32> -> vector<8x512xf32>
    %c0_3 = arith.constant 0 : index
    %c0_4 = arith.constant 0 : index
    %4 = vector.load %arg3[%c0_3, %c0_4] : memref<1x512xf32, #tpu.memory_space<vmem>>, vector<1x512xf32>
    %5 = vector.broadcast %4 : vector<1x512xf32> to vector<8x512xf32>
    %6 = arith.addf %3, %5 : vector<8x512xf32>
    %7 = arith.negf %6 : vector<8x512xf32>
    %8 = math.exp %7 : vector<8x512xf32>
    %cst_5 = arith.constant 1.000000e+00 : f32
    %9 = vector.broadcast %cst_5 : f32 to vector<8x512xf32>
    %10 = arith.addf %9, %8 : vector<8x512xf32>
    %11 = arith.divf %9, %10 : vector<8x512xf32>
    %12 = arith.truncf %11 : vector<8x512xf32> to vector<8x512xbf16>
    %c0_6 = arith.constant 0 : index
    %c0_7 = arith.constant 0 : index
    %13 = vector.load %arg4[%c0_6, %c0_7] : memref<512x256xbf16, #tpu.memory_space<vmem>>, vector<512x256xbf16>
    %cst_8 = arith.constant dense<0.000000e+00> : vector<8x256xf32>
    %14 = tpu.matmul %12, %13, %cst_8 {dimension_numbers = #tpu.dot_dimension_numbers<[1], [0], [0], [1], [0, 0, 1, 1], [], []>} : vector<8x512xbf16>, vector<512x256xbf16>, vector<8x256xf32> -> vector<8x256xf32>
    %c0_9 = arith.constant 0 : index
    %c0_10 = arith.constant 0 : index
    %15 = vector.load %arg5[%c0_9, %c0_10] : memref<1x256xf32, #tpu.memory_space<vmem>>, vector<1x256xf32>
    %16 = vector.broadcast %15 : vector<1x256xf32> to vector<8x256xf32>
    %17 = arith.addf %14, %16 : vector<8x256xf32>
    %cst_11 = arith.constant 0.000000e+00 : f32
    %18 = vector.broadcast %cst_11 : f32 to vector<8x256xf32>
    %19 = arith.maximumf %17, %18 : vector<8x256xf32>
    %20 = arith.truncf %19 : vector<8x256xf32> to vector<8x256xbf16>
    %c0_12 = arith.constant 0 : index
    %c0_13 = arith.constant 0 : index
    %21 = vector.load %arg6[%c0_12, %c0_13] : memref<256x128xbf16, #tpu.memory_space<vmem>>, vector<256x128xbf16>
    %cst_14 = arith.constant dense<0.000000e+00> : vector<8x128xf32>
    %22 = tpu.matmul %20, %21, %cst_14 {dimension_numbers = #tpu.dot_dimension_numbers<[1], [0], [0], [1], [0, 0, 1, 1], [], []>} : vector<8x256xbf16>, vector<256x128xbf16>, vector<8x128xf32> -> vector<8x128xf32>
    %c0_15 = arith.constant 0 : index
    %c0_16 = arith.constant 0 : index
    %23 = vector.load %arg7[%c0_15, %c0_16] : memref<1x128xf32, #tpu.memory_space<vmem>>, vector<1x128xf32>
    %24 = vector.broadcast %23 : vector<1x128xf32> to vector<8x128xf32>
    %25 = arith.addf %22, %24 : vector<8x128xf32>
    %26 = math.tanh %25 : vector<8x128xf32>
    %c0_17 = arith.constant 0 : index
    %c0_18 = arith.constant 0 : index
    %27 = vector.load %arg8[%c0_17, %c0_18] : memref<8x128xf32, #tpu.memory_space<vmem>>, vector<8x128xf32>
    tpu.vector_store %arg8[%c0_17, %c0_18], %26 {strides = array<i32>} : memref<8x128xf32, #tpu.memory_space<vmem>>, vector<8x128xf32>,
    return
  }
  func.func @transform_0(%arg0: i32) -> (i32, i32) {
    %c0_i32 = arith.constant 0 : i32
    %c0_i32_0 = arith.constant 0 : i32
    return %arg0, %c0_i32 : i32, i32
  }
  func.func @transform_1(%arg0: i32) -> (i32, i32) {
    %c0_i32 = arith.constant 0 : i32
    %c0_i32_0 = arith.constant 0 : i32
    %c0_i32_1 = arith.constant 0 : i32
    return %c0_i32, %c0_i32_0 : i32, i32
  }
  func.func @transform_2(%arg0: i32) -> (i32, i32) {
    %c0_i32 = arith.constant 0 : i32
    %c0_i32_0 = arith.constant 0 : i32
    %c0_i32_1 = arith.constant 0 : i32
    return %c0_i32, %c0_i32_0 : i32, i32
  }
  func.func @transform_3(%arg0: i32) -> (i32, i32) {
    %c0_i32 = arith.constant 0 : i32
    %c0_i32_0 = arith.constant 0 : i32
    %c0_i32_1 = arith.constant 0 : i32
    return %c0_i32, %c0_i32_0 : i32, i32
  }
  func.func @transform_4(%arg0: i32) -> (i32, i32) {
    %c0_i32 = arith.constant 0 : i32
    %c0_i32_0 = arith.constant 0 : i32
    %c0_i32_1 = arith.constant 0 : i32
    return %c0_i32, %c0_i32_0 : i32, i32
  }
  func.func @transform_5(%arg0: i32) -> (i32, i32) {
    %c0_i32 = arith.constant 0 : i32
    %c0_i32_0 = arith.constant 0 : i32
    %c0_i32_1 = arith.constant 0 : i32
    return %c0_i32, %c0_i32_0 : i32, i32
  }
  func.func @transform_6(%arg0: i32) -> (i32, i32) {
    %c0_i32 = arith.constant 0 : i32
    %c0_i32_0 = arith.constant 0 : i32
    %c0_i32_1 = arith.constant 0 : i32
    return %c0_i32, %c0_i32_0 : i32, i32
  }
  func.func @transform_7(%arg0: i32) -> (i32, i32) {
    %c0_i32 = arith.constant 0 : i32
    %c0_i32_0 = arith.constant 0 : i32
    return %arg0, %c0_i32 : i32, i32
  }
}

</mosaic_0001>

<bundles_post_ra>
// kernel: tpu_custom_call.1
= control target key start
LH: loop header
LB: loop body
LE: loop exit
PB: predicated region body
PF: predicated region fallthrough
CT: control target
= control target key end

     0   :  { %12 = vsyncpa [#allocation3], 0  ;;  %s2657_s0 = inlined_call_operand.hbm [shape: f32[1,512], index: 0, kind: input, shape index: {}]   ;;  %s2658_s1 = inlined_call_operand.hbm [shape: bf16[512,512], index: 1, kind: input, shape index: {}]   ;;  %s2659_s2 = inlined_call_operand.hbm [shape: f32[1,512], index: 2, kind: input, shape index: {}]   ;;  %s2660_s3 = inlined_call_operand.hbm [shape: bf16[512,256], index: 3, kind: input, shape index: {}]   ;;  %s2661_s4 = inlined_call_operand.vmem [shape: f32[1,256], index: 4, kind: input, shape index: {}]   ;;  %s2662_s5 = inlined_call_operand.hbm [shape: bf16[256,128], index: 5, kind: input, shape index: {}]   ;;  %s2663_s6 = inlined_call_operand.vmem [shape: f32[1,128], index: 6, kind: input, shape index: {}]   ;;  %s2664_s7 = inlined_call_operand.hbm [shape: f32[1,128], index: 7, kind: output, shape index: {}]  }
   0x1   :  { %13 = vsyncpa [#allocation6], 0 }
   0x2   :  { %14 = vsyncpa [#allocation9], 0 }
   0x3   :  { %15 = vsyncpa [#allocation4], 0 }
   0x4   :  { %20 = vsyncadd [#allocation3], 448  ;;  %s2553_s24 = smov [#allocation5]  }
   0x5   :  { %s33_s25 = sshll.u32 %s2553_s24, 4  ;;  %s34_s25 = int_to_ptr.vmem [resolvable:$true] %s33_s25 }
   0x6   :  { %s2433_s26 = scalar_lea.vmem %s34_s25, 16384  ;;  %p2438_p1 = scmp.lt.s32.totalorder %s34_s25, %s34_s25 }
   0x7   :  { %p2434_p0 = scmp.ne.s32.totalorder %s34_s25, %s2433_s26  ;;  %p2439_p2 = scmp.lt.s32.totalorder %s2433_s26, %s2433_s26 }
   0x9   :  { %p2440_p3 = por %p2439_p2, %p2438_p1 }
   0xb   :  { %p2441_p4 = pnand %p2440_p3, %p2434_p0 }
   0xd   :  { %2444 = shalt.err (!%p2441_p4)
}
   0xe   :  { %s2554_s27 = smov 256   ;;  %s2555_s28 = smov 16  }
   0xf   :  { %39 = dma.hbm_to_vmem [thread:$0]  %s2658_s1, 16384, %s34_s25, [#allocation6], %s2554_s27, %s2554_s27, %s2555_s28  }
  0x10   :  { %s2556_s8 = smov [#allocation8]  }
  0x11   :  { %s55_s9 = sshll.u32 %s2556_s8, 4  ;;  %s56_s9 = int_to_ptr.vmem [resolvable:$true] %s55_s9 }
  0x12   :  { %s2453_s10 = scalar_lea.vmem %s56_s9, 8192  ;;  %p2458_p6 = scmp.lt.s32.totalorder %s56_s9, %s56_s9 }
  0x13   :  { %p2454_p5 = scmp.ne.s32.totalorder %s56_s9, %s2453_s10  ;;  %p2459_p7 = scmp.lt.s32.totalorder %s2453_s10, %s2453_s10 }
  0x15   :  { %p2460_p8 = por %p2459_p7, %p2458_p6 }
  0x17   :  { %p2461_p9 = pnand %p2460_p8, %p2454_p5 }
  0x19   :  { %2464 = shalt.err (!%p2461_p9)
}
  0x1a   :  { %s2557_s11 = smov 128   ;;  %s2558_s12 = smov 8  }
  0x1b   :  { %61 = dma.hbm_to_vmem [thread:$0]  %s2660_s3, 8192, %s56_s9, [#allocation9], %s2557_s11, %s2557_s11, %s2558_s12  }
  0x1c   :  { %s2559_s15 = smov [#allocation2]  }
  0x1d   :  { %s21_s16 = sshll.u32 %s2559_s15, 4  ;;  %s22_s16 = int_to_ptr.vmem [resolvable:$true] %s21_s16 }
  0x1e   :  { %s2473_s1 = scalar_lea.vmem %s22_s16, 64  ;;  %s2477_s17 = scalar_lea.vmem %s22_s16, 512 }
  0x1f   :  { %p2474_p10 = scmp.ne.s32.totalorder %s22_s16, %s2473_s1  ;;  %p2478_p11 = scmp.lt.s32.totalorder %s22_s16, %s22_s16 }
  0x20   :  { %p2479_p12 = scmp.lt.s32.totalorder %s2477_s17, %s2473_s1 }
  0x22   :  { %p2480_p13 = por %p2479_p12, %p2478_p11 }
  0x24   :  { %p2481_p0 = pnand %p2480_p13, %p2474_p10 }
  0x26   :  { %2484 = shalt.err (!%p2481_p0)
}
  0x27   :  { %s2560_s18 = smov 64   ;;  %s2561_s19 = smov 4  }
  0x28   :  { %27 = dma.hbm_to_vmem [thread:$0]  %s2657_s0, 64, %s22_s16, [#allocation3], %s2560_s18, %s2560_s18, %s2561_s19  }
  0x29   :  { %s2562_s22 = smov [#allocation7]   ;;  %s2563_s3 = smov [#allocation10]  }
  0x2a   :  { %s46_s23 = sshll.u32 %s2562_s22, 4  ;;  %s69_s24 = sshll.u32 %s2563_s3, 4  ;;  %s47_s23 = int_to_ptr.vmem [resolvable:$true] %s46_s23  ;;  %s70_s24 = int_to_ptr.vmem [resolvable:$true] %s69_s24 }
  0x2b   :  { %s2493_s25 = scalar_lea.vmem %s47_s23, 64  ;;  %p2498_p2 = scmp.lt.s32.totalorder %s47_s23, %s47_s23 }
  0x2c   :  { %p2494_p1 = scmp.ne.s32.totalorder %s47_s23, %s2493_s25  ;;  %p2499_p3 = scmp.lt.s32.totalorder %s2493_s25, %s2493_s25 }
  0x2e   :  { %p2500_p4 = por %p2499_p3, %p2498_p2 }
  0x30   :  { %p2501_p5 = pnand %p2500_p4, %p2494_p1 }
  0x32   :  { %2504 = shalt.err (!%p2501_p5)
}
  0x33   :  { %49 = dma.hbm_to_vmem [thread:$0]  %s2659_s2, 64, %s47_s23, [#allocation6]  }
  0x34   :  { %s2513_s29 = scalar_lea.vmem %s70_s24, 2048  ;;  %p2518_p7 = scmp.lt.s32.totalorder %s70_s24, %s70_s24 }
  0x35   :  { %p2514_p6 = scmp.ne.s32.totalorder %s70_s24, %s2513_s29  ;;  %p2519_p8 = scmp.lt.s32.totalorder %s2513_s29, %s2513_s29 }
  0x37   :  { %p2520_p9 = por %p2519_p8, %p2518_p7 }
  0x39   :  { %p2521_p10 = pnand %p2520_p9, %p2514_p6 }
  0x3b   :  { %2524 = shalt.err (!%p2521_p10)
}
  0x3c   :  { %75 = dma.hbm_to_vmem [thread:$0]  %s2662_s5, 2048, %s70_s24, [#allocation9], %s2560_s18, %s2560_s18, %s2561_s19  }
  0x3d   :  { %2545 = dma.done.wait [#allocation3], 512  }
  0x3e   :  { %2546 = vsyncadd [#allocation3], 4294966784 }
  0x3f   :  { %2547 = dma.done.wait [#allocation6], 16448  }
  0x40   :  { %2548 = vsyncadd [#allocation6], 4294950848 }
  0x41   :  { %2549 = dma.done.wait [#allocation9], 10240  }
  0x42   :  { %2550 = vsyncadd [#allocation9], 4294957056  ;;  %v2095_v0 = vld [vmem:[#allocation5 + $0xe4] ss:$16 sps:$4 sm:$0xff]   ;;  %v2099_v2 = vld [vmem:[#allocation5 + $0xe0] ss:$16 sps:$4 sm:$0xff]   ;;  %v117_v41 = vlaneseq }
  0x43   :  { %v2097_v1 = vld [vmem:[#allocation5 + $0x2e4] ss:$16 sps:$4 sm:$0xff]   ;;  %976 = vmatprep.subr.bf16.mxu0 %v2095_v0  ;;  %v2100_v3 = vld [vmem:[#allocation5 + $0x2e0] ss:$16 sps:$4 sm:$0xff]   ;;  %v2564_v39 = vmov 1966171168  }
  0x44   :  { %1017 = vmatprep.subr.bf16.mxu1 %v2097_v1  ;;  %v2101_v4 = vld [vmem:[#allocation5 + $0xc4] ss:$16 sps:$4 sm:$0xff]   ;;  %977 = vmatpush1.bf16.msra.mxu0 %v2099_v2  ;;  %v2105_v6 = vld [vmem:[#allocation5 + $0xc0] ss:$16 sps:$4 sm:$0xff]   ;;  %v115_v40 = vunpack.c.l.s4 %v2564_v39  ;;  %v2623_v48 = vshrl.u32 %v117_v41, 7 }
  0x45   :  { %1018 = vmatpush1.bf16.msra.mxu1 %v2100_v3  ;;  %v2103_v5 = vld [vmem:[#allocation5 + $0x2c4] ss:$16 sps:$4 sm:$0xff]   ;;  %978 = vmatprep.subr.bf16.mxu0 %v2101_v4  ;;  %v2106_v7 = vld [vmem:[#allocation5 + $0x2c0] ss:$16 sps:$4 sm:$0xff]   ;;  %v2218_v39 = vld [vmem:[#allocation5 + $0x28c] ss:$16 sps:$4 sm:$0xff]  }
  0x46   :  { %1019 = vmatprep.subr.bf16.mxu1 %v2103_v5  ;;  %v2107_v8 = vld [vmem:[#allocation5 + $0xa4] ss:$16 sps:$4 sm:$0xff]   ;;  %v2111_v10 = vld [vmem:[#allocation5 + $0xa0] ss:$16 sps:$4 sm:$0xff]   ;;  %v116_v47 = vunpack.c.0.s8 %v115_v40  ;;  %v2213_v40 = vld [vmem:[#allocation5 + $0x88] ss:$16 sps:$4 sm:$0xff]  }
  0x47   :  { %v2109_v9 = vld [vmem:[#allocation5 + $0x2a4] ss:$16 sps:$4 sm:$0xff]   ;;  %v2112_v11 = vld [vmem:[#allocation5 + $0x2a0] ss:$16 sps:$4 sm:$0xff]   ;;  %v2216_v41 = vld [vmem:[#allocation5 + $0x288] ss:$16 sps:$4 sm:$0xff]  }
  0x48   :  { %979 = vmatpush1.bf16.msra.mxu0 %v2105_v6  ;;  %v2113_v12 = vld [vmem:[#allocation5 + $0x84] ss:$16 sps:$4 sm:$0xff]   ;;  %v2117_v14 = vld [vmem:[#allocation5 + $0x80] ss:$16 sps:$4 sm:$0xff]   ;;  %v119_v55 = vsub.s32 %v116_v47, %v2623_v48  ;;  %v2230_v47 = vld [vmem:[#allocation5 + $0x24c] ss:$16 sps:$4 sm:$0xff]  }
  0x49   :  { %1020 = vmatpush1.bf16.msra.mxu1 %v2106_v7  ;;  %980 = vmatprep.subr.bf16.mxu0 %v2107_v8  ;;  %v2115_v13 = vld [vmem:[#allocation5 + $0x284] ss:$16 sps:$4 sm:$0xff]   ;;  %v2118_v15 = vld [vmem:[#allocation5 + $0x280] ss:$16 sps:$4 sm:$0xff]  }
  0x4a   :  { %1021 = vmatprep.subr.bf16.mxu1 %v2109_v9  ;;  %v2119_v16 = vld [vmem:[#allocation5 + $0x64] ss:$16 sps:$4 sm:$0xff]   ;;  %v2123_v18 = vld [vmem:[#allocation5 + $0x60] ss:$16 sps:$4 sm:$0xff]  }
  0x4b   :  { %v2121_v17 = vld [vmem:[#allocation5 + $0x264] ss:$16 sps:$4 sm:$0xff]   ;;  %v2124_v19 = vld [vmem:[#allocation5 + $0x260] ss:$16 sps:$4 sm:$0xff]  }
  0x4c   :  { %981 = vmatpush1.bf16.msra.mxu0 %v2111_v10  ;;  %v2125_v20 = vld [vmem:[#allocation5 + $0x44] ss:$16 sps:$4 sm:$0xff]   ;;  %v2129_v22 = vld [vmem:[#allocation5 + $0x40] ss:$16 sps:$4 sm:$0xff]  }
  0x4d   :  { %1022 = vmatpush1.bf16.msra.mxu1 %v2112_v11  ;;  %982 = vmatprep.subr.bf16.mxu0 %v2113_v12  ;;  %v2127_v21 = vld [vmem:[#allocation5 + $0x244] ss:$16 sps:$4 sm:$0xff]   ;;  %v2130_v23 = vld [vmem:[#allocation5 + $0x240] ss:$16 sps:$4 sm:$0xff]  }
  0x4e   :  { %1023 = vmatprep.subr.bf16.mxu1 %v2115_v13  ;;  %v2131_v24 = vld [vmem:[#allocation5 + $0x24] ss:$16 sps:$4 sm:$0xff]   ;;  %v2135_v26 = vld [vmem:[#allocation5 + $0x20] ss:$16 sps:$4 sm:$0xff]  }
  0x4f   :  { %v2133_v25 = vld [vmem:[#allocation5 + $0x224] ss:$16 sps:$4 sm:$0xff]   ;;  %v2136_v27 = vld [vmem:[#allocation5 + $0x220] ss:$16 sps:$4 sm:$0xff]  }
  0x50   :  { %983 = vmatpush1.bf16.msra.mxu0 %v2117_v14  ;;  %v2137_v28 = vld [vmem:[#allocation5 + $0x4] ss:$16 sps:$4 sm:$0xff]   ;;  %v2141_v30 = vld [vmem:[#allocation5] ss:$16 sps:$4 sm:$0xff]  }
  0x51   :  { %1024 = vmatpush1.bf16.msra.mxu1 %v2118_v15  ;;  %984 = vmatprep.subr.bf16.mxu0 %v2119_v16  ;;  %v2139_v29 = vld [vmem:[#allocation5 + $0x204] ss:$16 sps:$4 sm:$0xff]   ;;  %v2142_v31 = vld [vmem:[#allocation5 + $0x200] ss:$16 sps:$4 sm:$0xff]  }
  0x52   :  { %1025 = vmatprep.subr.bf16.mxu1 %v2121_v17  ;;  %v2143_v32 = vld [vmem:[#allocation5 + $0x1e4] ss:$16 sps:$4 sm:$0xff]   ;;  %v2147_v34 = vld [vmem:[#allocation5 + $0x1e0] ss:$16 sps:$4 sm:$0xff]  }
  0x53   :  { %v2145_v33 = vld [vmem:[#allocation5 + $0x3e4] ss:$16 sps:$4 sm:$0xff]   ;;  %v2148_v35 = vld [vmem:[#allocation5 + $0x3e0] ss:$16 sps:$4 sm:$0xff]  }
  0x54   :  { %985 = vmatpush1.bf16.msra.mxu0 %v2123_v18  ;;  %v2149_v36 = vld [vmem:[#allocation5 + $0x1c4] ss:$16 sps:$4 sm:$0xff]   ;;  %v2153_v38 = vld [vmem:[#allocation5 + $0x1c0] ss:$16 sps:$4 sm:$0xff]  }
  0x55   :  { %1026 = vmatpush1.bf16.msra.mxu1 %v2124_v19  ;;  %986 = vmatprep.subr.bf16.mxu0 %v2125_v20  ;;  %v2151_v37 = vld [vmem:[#allocation5 + $0x3c4] ss:$16 sps:$4 sm:$0xff]   ;;  %v2154_v42 = vld [vmem:[#allocation5 + $0x3c0] ss:$16 sps:$4 sm:$0xff]  }
  0x56   :  { %1027 = vmatprep.subr.bf16.mxu1 %v2127_v21  ;;  %v2155_v43 = vld [vmem:[#allocation5 + $0x1a4] ss:$16 sps:$4 sm:$0xff]   ;;  %v2159_v45 = vld [vmem:[#allocation5 + $0x1a0] ss:$16 sps:$4 sm:$0xff]  }
  0x57   :  { %v2157_v44 = vld [vmem:[#allocation5 + $0x3a4] ss:$16 sps:$4 sm:$0xff]   ;;  %v2160_v46 = vld [vmem:[#allocation5 + $0x3a0] ss:$16 sps:$4 sm:$0xff]  }
  0x58   :  { %987 = vmatpush1.bf16.msra.mxu0 %v2129_v22  ;;  %v2161_v49 = vld [vmem:[#allocation5 + $0x184] ss:$16 sps:$4 sm:$0xff]   ;;  %v2165_v51 = vld [vmem:[#allocation5 + $0x180] ss:$16 sps:$4 sm:$0xff]  }
  0x59   :  { %1028 = vmatpush1.bf16.msra.mxu1 %v2130_v23  ;;  %988 = vmatprep.subr.bf16.mxu0 %v2131_v24  ;;  %v2163_v50 = vld [vmem:[#allocation5 + $0x384] ss:$16 sps:$4 sm:$0xff]   ;;  %v2166_v52 = vld [vmem:[#allocation5 + $0x380] ss:$16 sps:$4 sm:$0xff]   ;;  %v2197_v24 = vld [vmem:[#allocation5 + $0xec] ss:$16 sps:$4 sm:$0xff]  }
  0x5a   :  { %1029 = vmatprep.subr.bf16.mxu1 %v2133_v25  ;;  %v2167_v53 = vld [vmem:[#allocation5 + $0x164] ss:$16 sps:$4 sm:$0xff]   ;;  %v2422_v57 = vld.sshfl [vmem:[#allocation2 + $0x8] sm:$0xff pattern:$0x75316420] }
  0x5b   :  { %v2169_v54 = vld [vmem:[#allocation5 + $0x364] ss:$16 sps:$4 sm:$0xff]   ;;  %v2424_v59 = vld.sshfl [vmem:[#allocation2 + $0x18] sm:$0xff pattern:$0x75316420] }
  0x5c   :  { %989 = vmatpush1.bf16.msra.mxu0 %v2135_v26  ;;  %v2421_v56 = vld.sshfl [vmem:[#allocation2] sm:$0xff pattern:$0x75316420]  ;;  %v2423_v58 = vld.sshfl [vmem:[#allocation2 + $0x10] sm:$0xff pattern:$0x75316420] }
  0x5d   :  { %1030 = vmatpush1.bf16.msra.mxu1 %v2136_v27  ;;  %990 = vmatprep.subr.bf16.mxu0 %v2137_v28  ;;  %v2171_v60 = vld [vmem:[#allocation5 + $0x160] ss:$16 sps:$4 sm:$0xff]   ;;  %v2173_v62 = vld [vmem:[#allocation5 + $0x144] ss:$16 sps:$4 sm:$0xff]   ;;  %v143_v0 = vcombine.high %v2421_v56, %v2422_v57  ;;  %v145_v1 = vcombine.high %v2423_v58, %v2424_v59  ;;  %v142_v5 = vcombine.low %v2421_v56, %v2422_v57  ;;  %v2200_v25 = vld [vmem:[#allocation5 + $0x2ec] ss:$16 sps:$4 sm:$0xff]  }
  0x5e   :  { %1031 = vmatprep.subr.bf16.mxu1 %v2139_v29  ;;  %v2172_v61 = vld [vmem:[#allocation5 + $0x360] ss:$16 sps:$4 sm:$0xff]   ;;  %v2175_v63 = vld [vmem:[#allocation5 + $0x344] ss:$16 sps:$4 sm:$0xff]   ;;  %v144_v6 = vcombine.low %v2423_v58, %v2424_v59  ;;  %v2195_v28 = vld [vmem:[#allocation5 + $0xe8] ss:$16 sps:$4 sm:$0xff]  }
  0x5f   :  { %v2177_v2 = vld [vmem:[#allocation5 + $0x140] ss:$16 sps:$4 sm:$0xff]   ;;  %v159_v4 = vrot.slane %v143_v0, %v119_v55  ;;  %v2179_v7 = vld [vmem:[#allocation5 + $0x124] ss:$16 sps:$4 sm:$0xff]   ;;  %v173_v8 = vrot.slane %v145_v1, %v119_v55  ;;  %v152_v14 = vrot.slane %v142_v5, %v119_v55  ;;  %v2198_v29 = vld [vmem:[#allocation5 + $0x2e8] ss:$16 sps:$4 sm:$0xff]  }
  0x60   :  { %991 = vmatpush1.bf16.msra.mxu0 %v2141_v30  ;;  %v2178_v3 = vld [vmem:[#allocation5 + $0x340] ss:$16 sps:$4 sm:$0xff]   ;;  %v2181_v9 = vld [vmem:[#allocation5 + $0x324] ss:$16 sps:$4 sm:$0xff]   ;;  %v166_v15 = vrot.slane %v144_v6, %v119_v55  ;;  %v2203_v30 = vld [vmem:[#allocation5 + $0xcc] ss:$16 sps:$4 sm:$0xff]  }
  0x61   :  { %1032 = vmatpush1.bf16.msra.mxu1 %v2142_v31  ;;  %992 = vmatprep.subr.bf16.mxu0 %v2143_v32  ;;  %v176_v10 = vcombine.low %v159_v4, %v173_v8  ;;  %v177_v11 = vcombine.high %v159_v4, %v173_v8  ;;  %v2183_v12 = vld [vmem:[#allocation5 + $0x120] ss:$16 sps:$4 sm:$0xff]   ;;  %v2185_v16 = vld [vmem:[#allocation5 + $0x104] ss:$16 sps:$4 sm:$0xff]   ;;  %v2206_v31 = vld [vmem:[#allocation5 + $0x2cc] ss:$16 sps:$4 sm:$0xff]  }
  0x62   :  { %1033 = vmatprep.subr.bf16.mxu1 %v2145_v33  ;;  %v2184_v13 = vld [vmem:[#allocation5 + $0x320] ss:$16 sps:$4 sm:$0xff]   ;;  %v2187_v19 = vld [vmem:[#allocation5 + $0x304] ss:$16 sps:$4 sm:$0xff]   ;;  %v174_v22 = vcombine.low %v152_v14, %v166_v15  ;;  %v175_v23 = vcombine.high %v152_v14, %v166_v15  ;;  %v2201_v32 = vld [vmem:[#allocation5 + $0xc8] ss:$16 sps:$4 sm:$0xff]  }
  0x63   :  { %v183_v17 = vpack.c.bf16 %v176_v10, %v176_v10  ;;  %v185_v18 = vpack.c.bf16 %v177_v11, %v177_v11  ;;  %v2189_v20 = vld [vmem:[#allocation5 + $0x100] ss:$16 sps:$4 sm:$0xff]   ;;  %v2204_v33 = vld [vmem:[#allocation5 + $0x2c8] ss:$16 sps:$4 sm:$0xff]   ;;  %v2239_v55 = vld [vmem:[#allocation5 + $0xc] ss:$16 sps:$4 sm:$0xff]  }
  0x64   :  { %993 = vmatpush2.bf16.msra.mxu0 %v2147_v34  ;;  %v2190_v21 = vld [vmem:[#allocation5 + $0x300] ss:$16 sps:$4 sm:$0xff]   ;;  %v2626_v26 = vpack.c.bf16 %v174_v22, %v174_v22  ;;  %v2628_v27 = vpack.c.bf16 %v175_v23, %v175_v23  ;;  %v2209_v34 = vld [vmem:[#allocation5 + $0xac] ss:$16 sps:$4 sm:$0xff]   ;;  %v2237_v57 = vld [vmem:[#allocation5 + $0x8] ss:$16 sps:$4 sm:$0xff]  }
  0x65   :  { %1034 = vmatpush2.bf16.msra.mxu1 %v2148_v35  ;;  %994 = vmatprep.subr.bf16.mxu0 %v2149_v36  ;;  %v2212_v35 = vld [vmem:[#allocation5 + $0x2ac] ss:$16 sps:$4 sm:$0xff]   ;;  %v2207_v36 = vld [vmem:[#allocation5 + $0xa8] ss:$16 sps:$4 sm:$0xff]  }
  0x66   :  { %1035 = vmatprep.subr.bf16.mxu1 %v2151_v37  ;;  %1008 = vmatprep.mubr.bf16.mxu0 %v183_v17  ;;  %v2210_v37 = vld [vmem:[#allocation5 + $0x2a8] ss:$16 sps:$4 sm:$0xff]   ;;  %v2242_v56 = vld [vmem:[#allocation5 + $0x20c] ss:$16 sps:$4 sm:$0xff]  }
  0x67   :  { %1049 = vmatprep.mubr.bf16.mxu1 %v185_v18  ;;  %v2240_v58 = vld [vmem:[#allocation5 + $0x208] ss:$16 sps:$4 sm:$0xff]   ;;  %v2245_v59 = vld [vmem:[#allocation5 + $0x1ec] ss:$16 sps:$4 sm:$0xff]  }
  0x68   :  { %995 = vmatpush2.bf16.msra.mxu0 %v2153_v38  ;;  %v2215_v38 = vld [vmem:[#allocation5 + $0x8c] ss:$16 sps:$4 sm:$0xff]   ;;  %v2249_v1 = vld [vmem:[#allocation5 + $0x1c8] ss:$16 sps:$4 sm:$0xff]  }
  0x69   :  { %1036 = vmatpush2.bf16.msra.mxu1 %v2154_v42  ;;  %996 = vmatprep.subr.bf16.mxu0 %v2155_v43  ;;  %v2221_v42 = vld [vmem:[#allocation5 + $0x6c] ss:$16 sps:$4 sm:$0xff]   ;;  %v2255_v5 = vld [vmem:[#allocation5 + $0x1a8] ss:$16 sps:$4 sm:$0xff]  }
  0x6a   :  { %1037 = vmatprep.subr.bf16.mxu1 %v2157_v44  ;;  %v2224_v43 = vld [vmem:[#allocation5 + $0x26c] ss:$16 sps:$4 sm:$0xff]   ;;  %v2219_v44 = vld [vmem:[#allocation5 + $0x68] ss:$16 sps:$4 sm:$0xff]  }
  0x6b   :  { %v2254_v0 = vld [vmem:[#allocation5 + $0x3cc] ss:$16 sps:$4 sm:$0xff]   ;;  %v2258_v6 = vld [vmem:[#allocation5 + $0x3a8] ss:$16 sps:$4 sm:$0xff]  }
  0x6c   :  { %997 = vmatpush2.bf16.msra.mxu0 %v2159_v45  ;;  %v2222_v45 = vld [vmem:[#allocation5 + $0x268] ss:$16 sps:$4 sm:$0xff]   ;;  %v2260_v4 = vld [vmem:[#allocation5 + $0x3ac] ss:$16 sps:$4 sm:$0xff]  }
  0x6d   :  { %1038 = vmatpush2.bf16.msra.mxu1 %v2160_v46  ;;  %998 = vmatprep.subr.bf16.mxu0 %v2161_v49  ;;  %v2227_v46 = vld [vmem:[#allocation5 + $0x4c] ss:$16 sps:$4 sm:$0xff]   ;;  %v2225_v49 = vld [vmem:[#allocation5 + $0x48] ss:$16 sps:$4 sm:$0xff]  }
  0x6e   :  { %1039 = vmatprep.subr.bf16.mxu1 %v2163_v50  ;;  %v2228_v50 = vld [vmem:[#allocation5 + $0x248] ss:$16 sps:$4 sm:$0xff]   ;;  %v2266_v8 = vld [vmem:[#allocation5 + $0x38c] ss:$16 sps:$4 sm:$0xff]  }
  0x6f   :  { %v2264_v10 = vld [vmem:[#allocation5 + $0x388] ss:$16 sps:$4 sm:$0xff]   ;;  %v2269_v11 = vld [vmem:[#allocation5 + $0x16c] ss:$16 sps:$4 sm:$0xff]  }
  0x70   :  { %999 = vmatpush2.bf16.msra.mxu0 %v2165_v51  ;;  %v2233_v51 = vld [vmem:[#allocation5 + $0x2c] ss:$16 sps:$4 sm:$0xff]   ;;  %v2270_v14 = vld [vmem:[#allocation5 + $0x368] ss:$16 sps:$4 sm:$0xff]  }
  0x71   :  { %1040 = vmatpush2.bf16.msra.mxu1 %v2166_v52  ;;  %1000 = vmatprep.subr.bf16.mxu0 %v2167_v53  ;;  %v2236_v52 = vld [vmem:[#allocation5 + $0x22c] ss:$16 sps:$4 sm:$0xff]   ;;  %v2231_v53 = vld [vmem:[#allocation5 + $0x28] ss:$16 sps:$4 sm:$0xff]  }
  0x72   :  { %1041 = vmatprep.subr.bf16.mxu1 %v2169_v54  ;;  %v2234_v54 = vld [vmem:[#allocation5 + $0x228] ss:$16 sps:$4 sm:$0xff]   ;;  %v2275_v15 = vld [vmem:[#allocation5 + $0x14c] ss:$16 sps:$4 sm:$0xff]  }
  0x73   :  { %v2282_v22 = vld [vmem:[#allocation5 + $0x328] ss:$16 sps:$4 sm:$0xff]   ;;  %v2287_v23 = vld [vmem:[#allocation5 + $0x10c] ss:$16 sps:$4 sm:$0xff]  }
  0x74   :  { %1001 = vmatpush2.bf16.msra.mxu0 %v2171_v60  ;;  %v2248_v60 = vld [vmem:[#allocation5 + $0x3ec] ss:$16 sps:$4 sm:$0xff]  }
  0x75   :  { %1042 = vmatpush2.bf16.msra.mxu1 %v2172_v61  ;;  %1002 = vmatprep.subr.bf16.mxu0 %v2173_v62  ;;  %v2243_v61 = vld [vmem:[#allocation5 + $0x1e8] ss:$16 sps:$4 sm:$0xff]  }
  0x76   :  { %1043 = vmatprep.subr.bf16.mxu1 %v2175_v63  ;;  %v2246_v62 = vld [vmem:[#allocation5 + $0x3e8] ss:$16 sps:$4 sm:$0xff]   ;;  %v2251_v63 = vld [vmem:[#allocation5 + $0x1cc] ss:$16 sps:$4 sm:$0xff]  }
  0x78   :  { %1003 = vmatpush2.bf16.msra.mxu0 %v2177_v2  ;;  %v2252_v2 = vld [vmem:[#allocation5 + $0x3c8] ss:$16 sps:$4 sm:$0xff]  }
  0x79   :  { %1044 = vmatpush2.bf16.msra.mxu1 %v2178_v3  ;;  %1004 = vmatprep.subr.bf16.mxu0 %v2179_v7  ;;  %v2257_v3 = vld [vmem:[#allocation5 + $0x1ac] ss:$16 sps:$4 sm:$0xff]  }
  0x7a   :  { %1045 = vmatprep.subr.bf16.mxu1 %v2181_v9  ;;  %v2263_v7 = vld [vmem:[#allocation5 + $0x18c] ss:$16 sps:$4 sm:$0xff]   ;;  %v2261_v9 = vld [vmem:[#allocation5 + $0x188] ss:$16 sps:$4 sm:$0xff]  }
  0x7c   :  { %1005 = vmatpush2.bf16.msra.mxu0 %v2183_v12  ;;  %v2272_v12 = vld [vmem:[#allocation5 + $0x36c] ss:$16 sps:$4 sm:$0xff]  }
  0x7d   :  { %1046 = vmatpush2.bf16.msra.mxu1 %v2184_v13  ;;  %1006 = vmatprep.subr.bf16.mxu0 %v2185_v16  ;;  %v2267_v13 = vld [vmem:[#allocation5 + $0x168] ss:$16 sps:$4 sm:$0xff]   ;;  %v2278_v16 = vld [vmem:[#allocation5 + $0x34c] ss:$16 sps:$4 sm:$0xff]  }
  0x7e   :  { %1047 = vmatprep.subr.bf16.mxu1 %v2187_v19  ;;  %v2281_v19 = vld [vmem:[#allocation5 + $0x12c] ss:$16 sps:$4 sm:$0xff]  }
  0x80   :  { %1007 = vmatpush2.bf16.msra.mxu0 %v2189_v20  ;;  %v2284_v20 = vld [vmem:[#allocation5 + $0x32c] ss:$16 sps:$4 sm:$0xff]  }
  0x81   :  { %1048 = vmatpush2.bf16.msra.mxu1 %v2190_v21  ;;  %1058 = vmatprep.subr.bf16.mxu0 %v2197_v24  ;;  %v2279_v21 = vld [vmem:[#allocation5 + $0x128] ss:$16 sps:$4 sm:$0xff]   ;;  %v2290_v24 = vld [vmem:[#allocation5 + $0x30c] ss:$16 sps:$4 sm:$0xff]  }
  0x82   :  { %1099 = vmatprep.subr.bf16.mxu1 %v2200_v25  ;;  %v2285_v25 = vld [vmem:[#allocation5 + $0x108] ss:$16 sps:$4 sm:$0xff]  }
  0x83   :  { %1009 = vmatmul.mubr.bf16.vlgmr.msra.gmra.mxu0 %v2626_v26 }
  0x84   :  { %1050 = vmatmul.mubr.bf16.vlgmr.msra.gmra.mxu1 %v2628_v27  ;;  %1059 = vmatpush1.bf16.msra.mxu0 %v2195_v28  ;;  %v2288_v28 = vld [vmem:[#allocation5 + $0x308] ss:$16 sps:$4 sm:$0xff]  }
  0x85   :  { %1100 = vmatpush1.bf16.msra.mxu1 %v2198_v29  ;;  %1060 = vmatprep.subr.bf16.mxu0 %v2203_v30  ;;  %v2293_v29 = vld [vmem:[#allocation8 + $0x74] ss:$8 sps:$4 sm:$0xff]   ;;  %v2291_v30 = vld [vmem:[#allocation8 + $0x70] ss:$8 sps:$4 sm:$0xff]  }
  0x86   :  { %1101 = vmatprep.subr.bf16.mxu1 %v2206_v31  ;;  %1090 = vmatprep.mubr.bf16.mxu0 %v183_v17  ;;  %v2273_v17 = vld [vmem:[#allocation5 + $0x148] ss:$16 sps:$4 sm:$0xff]  }
  0x87   :  { %1131 = vmatprep.mubr.bf16.mxu1 %v185_v18  ;;  %v2276_v18 = vld [vmem:[#allocation5 + $0x348] ss:$16 sps:$4 sm:$0xff]  }
  0x88   :  { %1061 = vmatpush1.bf16.msra.mxu0 %v2201_v32  ;;  %v2296_v31 = vld [vmem:[#allocation8 + $0x64] ss:$8 sps:$4 sm:$0xff]   ;;  %v2294_v32 = vld [vmem:[#allocation8 + $0x60] ss:$8 sps:$4 sm:$0xff]  }
  0x89   :  { %1102 = vmatpush1.bf16.msra.mxu1 %v2204_v33  ;;  %1062 = vmatprep.subr.bf16.mxu0 %v2209_v34  ;;  %v2299_v33 = vld [vmem:[#allocation8 + $0x54] ss:$8 sps:$4 sm:$0xff]   ;;  %v2297_v34 = vld [vmem:[#allocation8 + $0x50] ss:$8 sps:$4 sm:$0xff]  }
  0x8a   :  { %1103 = vmatprep.subr.bf16.mxu1 %v2212_v35  ;;  %v2302_v35 = vld [vmem:[#allocation8 + $0x44] ss:$8 sps:$4 sm:$0xff]  }
  0x8c   :  { %1063 = vmatpush1.bf16.msra.mxu0 %v2207_v36  ;;  %v2300_v36 = vld [vmem:[#allocation8 + $0x40] ss:$8 sps:$4 sm:$0xff]  }
  0x8d   :  { %1104 = vmatpush1.bf16.msra.mxu1 %v2210_v37  ;;  %1064 = vmatprep.subr.bf16.mxu0 %v2215_v38  ;;  %v2305_v37 = vld [vmem:[#allocation8 + $0x34] ss:$8 sps:$4 sm:$0xff]   ;;  %v2303_v38 = vld [vmem:[#allocation8 + $0x30] ss:$8 sps:$4 sm:$0xff]  }
  0x8e   :  { %1105 = vmatprep.subr.bf16.mxu1 %v2218_v39  ;;  %v2308_v39 = vld [vmem:[#allocation8 + $0x24] ss:$8 sps:$4 sm:$0xff]  }
  0x90   :  { %1065 = vmatpush1.bf16.msra.mxu0 %v2213_v40  ;;  %v2309_v40 = vld [vmem:[#allocation8 + $0x10] ss:$8 sps:$4 sm:$0xff]  }
  0x91   :  { %1106 = vmatpush1.bf16.msra.mxu1 %v2216_v41  ;;  %1066 = vmatprep.subr.bf16.mxu0 %v2221_v42  ;;  %v2314_v41 = vld [vmem:[#allocation8 + $0x4] ss:$8 sps:$4 sm:$0xff]   ;;  %v2312_v42 = vld [vmem:[#allocation8] ss:$8 sps:$4 sm:$0xff]  }
  0x92   :  { %1107 = vmatprep.subr.bf16.mxu1 %v2224_v43  ;;  %v2317_v43 = vld [vmem:[#allocation8 + $0xf4] ss:$8 sps:$4 sm:$0xff]  }
  0x94   :  { %1067 = vmatpush1.bf16.msra.mxu0 %v2219_v44  ;;  %v2315_v44 = vld [vmem:[#allocation8 + $0xf0] ss:$8 sps:$4 sm:$0xff]  }
  0x95   :  { %1108 = vmatpush1.bf16.msra.mxu1 %v2222_v45  ;;  %1068 = vmatprep.subr.bf16.mxu0 %v2227_v46  ;;  %v2320_v45 = vld [vmem:[#allocation8 + $0xe4] ss:$8 sps:$4 sm:$0xff]   ;;  %v2318_v46 = vld [vmem:[#allocation8 + $0xe0] ss:$8 sps:$4 sm:$0xff]  }
  0x96   :  { %1109 = vmatprep.subr.bf16.mxu1 %v2230_v47  ;;  %v2323_v47 = vld [vmem:[#allocation8 + $0xd4] ss:$8 sps:$4 sm:$0xff]  }
  0x98   :  { %1069 = vmatpush1.bf16.msra.mxu0 %v2225_v49  ;;  %v2321_v49 = vld [vmem:[#allocation8 + $0xd0] ss:$8 sps:$4 sm:$0xff]  }
  0x99   :  { %1110 = vmatpush1.bf16.msra.mxu1 %v2228_v50  ;;  %1070 = vmatprep.subr.bf16.mxu0 %v2233_v51  ;;  %v2326_v50 = vld [vmem:[#allocation8 + $0xc4] ss:$8 sps:$4 sm:$0xff]   ;;  %v2341_v51 = vld [vmem:[#allocation8 + $0x174] ss:$8 sps:$4 sm:$0xff]  }
  0x9a   :  { %1111 = vmatprep.subr.bf16.mxu1 %v2236_v52  ;;  %v2324_v52 = vld [vmem:[#allocation8 + $0xc0] ss:$8 sps:$4 sm:$0xff]  }
  0x9c   :  { %1071 = vmatpush1.bf16.msra.mxu0 %v2231_v53  ;;  %v2339_v53 = vld [vmem:[#allocation8 + $0x170] ss:$8 sps:$4 sm:$0xff]  }
  0x9d   :  { %1112 = vmatpush1.bf16.msra.mxu1 %v2234_v54  ;;  %1072 = vmatprep.subr.bf16.mxu0 %v2239_v55  ;;  %v2329_v54 = vld [vmem:[#allocation8 + $0xb4] ss:$8 sps:$4 sm:$0xff]   ;;  %v2344_v55 = vld [vmem:[#allocation8 + $0x164] ss:$8 sps:$4 sm:$0xff]  }
  0x9e   :  { %1113 = vmatprep.subr.bf16.mxu1 %v2242_v56  ;;  %v2342_v56 = vld [vmem:[#allocation8 + $0x160] ss:$8 sps:$4 sm:$0xff]  }
  0xa0   :  { %1073 = vmatpush1.bf16.msra.mxu0 %v2237_v57  ;;  %v2347_v57 = vld [vmem:[#allocation8 + $0x154] ss:$8 sps:$4 sm:$0xff]  }
  0xa1   :  { %1114 = vmatpush1.bf16.msra.mxu1 %v2240_v58  ;;  %1074 = vmatprep.subr.bf16.mxu0 %v2245_v59  ;;  %v2327_v58 = vld [vmem:[#allocation8 + $0xb0] ss:$8 sps:$4 sm:$0xff]   ;;  %v2332_v59 = vld [vmem:[#allocation8 + $0xa4] ss:$8 sps:$4 sm:$0xff]  }
  0xa2   :  { %1115 = vmatprep.subr.bf16.mxu1 %v2248_v60  ;;  %v2345_v60 = vld [vmem:[#allocation8 + $0x150] ss:$8 sps:$4 sm:$0xff]  }
  0xa4   :  { %1075 = vmatpush2.bf16.msra.mxu0 %v2243_v61  ;;  %v2350_v61 = vld [vmem:[#allocation8 + $0x144] ss:$8 sps:$4 sm:$0xff]  }
  0xa5   :  { %1116 = vmatpush2.bf16.msra.mxu1 %v2246_v62  ;;  %1076 = vmatprep.subr.bf16.mxu0 %v2251_v63  ;;  %v2330_v62 = vld [vmem:[#allocation8 + $0xa0] ss:$8 sps:$4 sm:$0xff]   ;;  %v2335_v63 = vld [vmem:[#allocation8 + $0x94] ss:$8 sps:$4 sm:$0xff]  }
  0xa6   :  { %1117 = vmatprep.subr.bf16.mxu1 %v2254_v0  ;;  %v2348_v0 = vld [vmem:[#allocation8 + $0x140] ss:$8 sps:$4 sm:$0xff]  }
  0xa8   :  { %1077 = vmatpush2.bf16.msra.mxu0 %v2249_v1  ;;  %v2353_v1 = vld [vmem:[#allocation8 + $0x134] ss:$8 sps:$4 sm:$0xff]  }
  0xa9   :  { %1118 = vmatpush2.bf16.msra.mxu1 %v2252_v2  ;;  %1078 = vmatprep.subr.bf16.mxu0 %v2257_v3  ;;  %v2333_v2 = vld [vmem:[#allocation8 + $0x90] ss:$8 sps:$4 sm:$0xff]   ;;  %v2338_v3 = vld [vmem:[#allocation8 + $0x84] ss:$8 sps:$4 sm:$0xff]  }
  0xaa   :  { %1119 = vmatprep.subr.bf16.mxu1 %v2260_v4  ;;  %v2351_v4 = vld [vmem:[#allocation8 + $0x130] ss:$8 sps:$4 sm:$0xff]  }
  0xac   :  { %1079 = vmatpush2.bf16.msra.mxu0 %v2255_v5  ;;  %v2356_v5 = vld [vmem:[#allocation8 + $0x124] ss:$8 sps:$4 sm:$0xff]  }
  0xad   :  { %1120 = vmatpush2.bf16.msra.mxu1 %v2258_v6  ;;  %1080 = vmatprep.subr.bf16.mxu0 %v2263_v7  ;;  %v2336_v6 = vld [vmem:[#allocation8 + $0x80] ss:$8 sps:$4 sm:$0xff]  }
  0xae   :  { %1121 = vmatprep.subr.bf16.mxu1 %v2266_v8  ;;  %v2354_v7 = vld [vmem:[#allocation8 + $0x120] ss:$8 sps:$4 sm:$0xff]   ;;  %v2359_v8 = vld [vmem:[#allocation8 + $0x114] ss:$8 sps:$4 sm:$0xff]  }
  0xb0   :  { %1081 = vmatpush2.bf16.msra.mxu0 %v2261_v9  ;;  %v2357_v9 = vld [vmem:[#allocation8 + $0x110] ss:$8 sps:$4 sm:$0xff]  }
  0xb1   :  { %1122 = vmatpush2.bf16.msra.mxu1 %v2264_v10  ;;  %1082 = vmatprep.subr.bf16.mxu0 %v2269_v11  ;;  %v2362_v10 = vld [vmem:[#allocation8 + $0x104] ss:$8 sps:$4 sm:$0xff]   ;;  %v2360_v11 = vld [vmem:[#allocation8 + $0x100] ss:$8 sps:$4 sm:$0xff]  }
  0xb2   :  { %1123 = vmatprep.subr.bf16.mxu1 %v2272_v12  ;;  %v2365_v12 = vld [vmem:[#allocation8 + $0x1f4] ss:$8 sps:$4 sm:$0xff]  }
  0xb4   :  { %1083 = vmatpush2.bf16.msra.mxu0 %v2267_v13  ;;  %v2363_v13 = vld [vmem:[#allocation8 + $0x1f0] ss:$8 sps:$4 sm:$0xff]  }
  0xb5   :  { %1124 = vmatpush2.bf16.msra.mxu1 %v2270_v14  ;;  %1084 = vmatprep.subr.bf16.mxu0 %v2275_v15  ;;  %v2368_v14 = vld [vmem:[#allocation8 + $0x1e4] ss:$8 sps:$4 sm:$0xff]   ;;  %v2366_v15 = vld [vmem:[#allocation8 + $0x1e0] ss:$8 sps:$4 sm:$0xff]  }
  0xb6   :  { %1125 = vmatprep.subr.bf16.mxu1 %v2278_v16  ;;  %v2371_v16 = vld [vmem:[#allocation8 + $0x1d4] ss:$8 sps:$4 sm:$0xff]  }
  0xb8   :  { %1085 = vmatpush2.bf16.msra.mxu0 %v2273_v17  ;;  %v2369_v17 = vld [vmem:[#allocation8 + $0x1d0] ss:$8 sps:$4 sm:$0xff]  }
  0xb9   :  { %1126 = vmatpush2.bf16.msra.mxu1 %v2276_v18  ;;  %1086 = vmatprep.subr.bf16.mxu0 %v2281_v19  ;;  %v2374_v18 = vld [vmem:[#allocation8 + $0x1c4] ss:$8 sps:$4 sm:$0xff]   ;;  %v2372_v19 = vld [vmem:[#allocation8 + $0x1c0] ss:$8 sps:$4 sm:$0xff]  }
  0xba   :  { %1127 = vmatprep.subr.bf16.mxu1 %v2284_v20  ;;  %v2377_v20 = vld [vmem:[#allocation8 + $0x1b4] ss:$8 sps:$4 sm:$0xff]  }
  0xbc   :  { %1087 = vmatpush2.bf16.msra.mxu0 %v2279_v21  ;;  %v2375_v21 = vld [vmem:[#allocation8 + $0x1b0] ss:$8 sps:$4 sm:$0xff]  }
  0xbd   :  { %1128 = vmatpush2.bf16.msra.mxu1 %v2282_v22  ;;  %1088 = vmatprep.subr.bf16.mxu0 %v2287_v23  ;;  %v2380_v22 = vld [vmem:[#allocation8 + $0x1a4] ss:$8 sps:$4 sm:$0xff]   ;;  %v2378_v23 = vld [vmem:[#allocation8 + $0x1a0] ss:$8 sps:$4 sm:$0xff]  }
  0xbe   :  { %1129 = vmatprep.subr.bf16.mxu1 %v2290_v24  ;;  %v2383_v24 = vld [vmem:[#allocation8 + $0x194] ss:$8 sps:$4 sm:$0xff]  }
  0xc0   :  { %1089 = vmatpush2.bf16.msra.mxu0 %v2285_v25  ;;  %v2381_v25 = vld [vmem:[#allocation8 + $0x190] ss:$8 sps:$4 sm:$0xff]  }
  0xc1   :  { %1130 = vmatpush2.bf16.msra.mxu1 %v2288_v28  ;;  %1564 = vmatprep.subr.bf16.mxu0 %v2293_v29  ;;  %v2386_v28 = vld [vmem:[#allocation8 + $0x184] ss:$8 sps:$4 sm:$0xff]   ;;  %v2384_v29 = vld [vmem:[#allocation8 + $0x180] ss:$8 sps:$4 sm:$0xff]  }
  0xc2   :  { %1605 = vmatprep.subr.bf16.mxu1 %v2341_v51 }
  0xc3   :  { %1091 = vmatmul.mubr.bf16.vlgmr.msra.gmra.mxu0 %v2626_v26  ;;  %v2306_v26 = vld [vmem:[#allocation8 + $0x20] ss:$8 sps:$4 sm:$0xff]  }
  0xc4   :  { %1132 = vmatmul.mubr.bf16.vlgmr.msra.gmra.mxu1 %v2628_v27  ;;  %1565 = vmatpush1.bf16.msra.mxu0 %v2291_v30  ;;  %v2311_v27 = vld [vmem:[#allocation8 + $0x14] ss:$8 sps:$4 sm:$0xff]   ;;  %v318_v30 = vsub.s32 0, %v2623_v48 }
  0xc5   :  { %1566 = vmatprep.subr.bf16.mxu0 %v2296_v31  ;;  %1606 = vmatpush1.bf16.msra.mxu1 %v2339_v53  ;;  %v314_v31 = vld [vmem:[#allocation7] sm:$0xf] }
  0xc6   :  { %1607 = vmatprep.subr.bf16.mxu1 %v2344_v55 }
  0xc8   :  { %1567 = vmatpush1.bf16.msra.mxu0 %v2294_v32  ;;  %v322_v32 = vsub.s32 1, %v2623_v48 }
  0xc9   :  { %1568 = vmatprep.subr.bf16.mxu0 %v2299_v33  ;;  %1608 = vmatpush1.bf16.msra.mxu1 %v2342_v56  ;;  %v319_v33 = vrot.slane %v314_v31, %v318_v30  ;;  %v326_v56 = vsub.s32 2, %v2623_v48 }
  0xca   :  { %1609 = vmatprep.subr.bf16.mxu1 %v2347_v57  ;;  %v330_v57 = vsub.s32 3, %v2623_v48  ;;  %v2042_v48 = vld [vmem:[%s2663_s6] ss:$0 sm:$0xff] }
  0xcc   :  { %1569 = vmatpush1.bf16.msra.mxu0 %v2297_v34  ;;  %v323_v34 = vrot.slane %v314_v31, %v322_v32 }
  0xcd   :  { %1570 = vmatprep.subr.bf16.mxu0 %v2302_v35  ;;  %1610 = vmatpush1.bf16.msra.mxu1 %v2345_v60 }
  0xce   :  { %1611 = vmatprep.subr.bf16.mxu1 %v2350_v61 }
  0xd0   :  { %1571 = vmatpush1.bf16.msra.mxu0 %v2300_v36 }
  0xd1   :  { %1572 = vmatprep.subr.bf16.mxu0 %v2305_v37  ;;  %1612 = vmatpush1.bf16.msra.mxu1 %v2348_v0 }
  0xd2   :  { %1613 = vmatprep.subr.bf16.mxu1 %v2353_v1 }
  0xd4   :  { %1573 = vmatpush1.bf16.msra.mxu0 %v2303_v38 }
  0xd5   :  { %1574 = vmatprep.subr.bf16.mxu0 %v2308_v39  ;;  %1614 = vmatpush1.bf16.msra.mxu1 %v2351_v4 }
  0xd6   :  { %1615 = vmatprep.subr.bf16.mxu1 %v2356_v5 }
  0xd8   :  { %1575 = vmatpush1.bf16.msra.mxu0 %v2306_v26 }
  0xd9   :  { %1576 = vmatprep.subr.bf16.mxu0 %v2311_v27  ;;  %1616 = vmatpush1.bf16.msra.mxu1 %v2354_v7 }
  0xda   :  { %1617 = vmatprep.subr.bf16.mxu1 %v2359_v8 }
  0xdc   :  { %1577 = vmatpush1.bf16.msra.mxu0 %v2309_v40 }
  0xdd   :  { %1578 = vmatprep.subr.bf16.mxu0 %v2314_v41  ;;  %1618 = vmatpush1.bf16.msra.mxu1 %v2357_v9 }
  0xde   :  { %1619 = vmatprep.subr.bf16.mxu1 %v2362_v10 }
  0xe0   :  { %1579 = vmatpush1.bf16.msra.mxu0 %v2312_v42 }
  0xe1   :  { %1580 = vmatprep.subr.bf16.mxu0 %v2317_v43  ;;  %1620 = vmatpush1.bf16.msra.mxu1 %v2360_v11 }
  0xe2   :  { %1621 = vmatprep.subr.bf16.mxu1 %v2365_v12 }
  0xe4   :  { %1581 = vmatpush2.bf16.msra.mxu0 %v2315_v44 }
  0xe5   :  { %1582 = vmatprep.subr.bf16.mxu0 %v2320_v45  ;;  %1622 = vmatpush2.bf16.msra.mxu1 %v2363_v13 }
  0xe6   :  { %1623 = vmatprep.subr.bf16.mxu1 %v2368_v14 }
  0xe8   :  { %1583 = vmatpush2.bf16.msra.mxu0 %v2318_v46 }
  0xe9   :  { %1584 = vmatprep.subr.bf16.mxu0 %v2323_v47  ;;  %1624 = vmatpush2.bf16.msra.mxu1 %v2366_v15 }
  0xea   :  { %1625 = vmatprep.subr.bf16.mxu1 %v2371_v16 }
  0xec   :  { %1585 = vmatpush2.bf16.msra.mxu0 %v2321_v49 }
  0xed   :  { %1586 = vmatprep.subr.bf16.mxu0 %v2326_v50  ;;  %1626 = vmatpush2.bf16.msra.mxu1 %v2369_v17 }
  0xee   :  { %1627 = vmatprep.subr.bf16.mxu1 %v2374_v18  ;;  %v2387_v18 = vld [vmem:[#allocation10 + $0x78] sm:$0xff]  }
  0xf0   :  { %1587 = vmatpush2.bf16.msra.mxu0 %v2324_v52 }
  0xf1   :  { %1588 = vmatprep.subr.bf16.mxu0 %v2329_v54  ;;  %1628 = vmatpush2.bf16.msra.mxu1 %v2372_v19  ;;  %v2388_v19 = vld [vmem:[#allocation10 + $0x38] sm:$0xff]  }
  0xf2   :  { %1629 = vmatprep.subr.bf16.mxu1 %v2377_v20  ;;  %v2389_v20 = vld [vmem:[#allocation10 + $0x70] sm:$0xff]  }
  0xf4   :  { %1589 = vmatpush2.bf16.msra.mxu0 %v2327_v58  ;;  %v327_v58 = vrot.slane %v314_v31, %v326_v56 }
  0xf5   :  { %1590 = vmatprep.subr.bf16.mxu0 %v2332_v59  ;;  %1630 = vmatpush2.bf16.msra.mxu1 %v2375_v21  ;;  %v331_v59 = vrot.slane %v314_v31, %v330_v57  ;;  %v2390_v21 = vld [vmem:[#allocation10 + $0x30] sm:$0xff]  }
  0xf6   :  { %1631 = vmatprep.subr.bf16.mxu1 %v2380_v22  ;;  %v2391_v22 = vld [vmem:[#allocation10 + $0x68] sm:$0xff]   ;;  %v2397_v31 = vld [vmem:[#allocation10 + $0x50] sm:$0xff]  }
  0xf8   :  { %1591 = vmatpush2.bf16.msra.mxu0 %v2330_v62 }
  0xf9   :  { %1592 = vmatprep.subr.bf16.mxu0 %v2335_v63  ;;  %1632 = vmatpush2.bf16.msra.mxu1 %v2378_v23  ;;  %v2392_v23 = vld [vmem:[#allocation10 + $0x28] sm:$0xff]  }
  0xfa   :  { %1633 = vmatprep.subr.bf16.mxu1 %v2383_v24  ;;  %v2393_v24 = vld [vmem:[#allocation10 + $0x60] sm:$0xff]  }
  0xfc   :  { %1593 = vmatpush2.bf16.msra.mxu0 %v2333_v2 }
  0xfd   :  { %1594 = vmatprep.subr.bf16.mxu0 %v2338_v3  ;;  %1634 = vmatpush2.bf16.msra.mxu1 %v2381_v25  ;;  %v2394_v25 = vld [vmem:[#allocation10 + $0x20] sm:$0xff]  }
  0xfe   :  { %1635 = vmatprep.subr.bf16.mxu1 %v2386_v28  ;;  %v2395_v28 = vld [vmem:[#allocation10 + $0x58] sm:$0xff]  }
 0x100   :  { %1595 = vmatpush2.bf16.msra.mxu0 %v2336_v6 }
 0x101   :  { %1636 = vmatpush2.bf16.msra.mxu1 %v2384_v29  ;;  %2059 = vmatprep.subr.bf16.mxu0 %v2387_v18  ;;  %v2396_v29 = vld [vmem:[#allocation10 + $0x18] sm:$0xff]  }
 0x143   :  { %v1010_v35 = vpop.f32.mrf.mxu0 }
 0x144   :  { %v1051_v36 = vpop.f32.mrf.mxu1  ;;  %v1011_v37 = vadd.f32 %v1010_v35, %v319_v33  ;;  %v2398_v33 = vld [vmem:[#allocation10 + $0x10] sm:$0xff]   ;;  %v2400_v35 = vld [vmem:[#allocation10 + $0x8] sm:$0xff]  }
 0x145   :  { %v1012_v38 = vpop.f32.mrf.mxu0 }
 0x146   :  { %v1053_v39 = vpop.f32.mrf.mxu1  ;;  %v1052_v26 = vadd.f32 %v1051_v36, %v1011_v37  ;;  %v1013_v27 = vadd.f32 %v1012_v38, %v323_v34  ;;  %v2399_v34 = vld [vmem:[#allocation10 + $0x48] sm:$0xff]   ;;  %v2401_v36 = vld [vmem:[#allocation10 + $0x40] sm:$0xff]  }
 0x147   :  { %v1014_v40 = vpop.f32.mrf.mxu0  ;;  %v2402_v37 = vld [vmem:[#allocation10] sm:$0xff]  }
 0x148   :  { %v1055_v41 = vpop.f32.mrf.mxu1  ;;  %v1974_v42 = vmul.f32 -1.442695, %v1052_v26  ;;  %v1054_v43 = vadd.f32 %v1053_v39, %v1013_v27  ;;  %v1232_v40 = vld [vmem:[%s2661_s4] sm:$0x3] }
 0x149   :  { %v1015_v44 = vpop.f32.mrf.mxu0  ;;  %v1237_v41 = vrot.slane %v1232_v40, %v318_v30 }
 0x14a   :  { %v1056_v45 = vpop.f32.mrf.mxu1  ;;  %2403 = vpow2.f32 %v1974_v42  ;;  %v1975_v46 = vmul.f32 -1.442695, %v1054_v43  ;;  %v1241_v42 = vrot.slane %v1232_v40, %v322_v32 }
 0x14c   :  { %2405 = vpow2.f32 %v1975_v46 }
 0x157   :  { %v2404_v47 = vpop.eup %2403 }
 0x158   :  { %v1152_v49 = vadd.f32 1.0, %v2404_v47 }
 0x159   :  { %v2406_v50 = vpop.eup %2405 }
 0x15a   :  { %v1153_v51 = vadd.f32 1.0, %v2406_v50  ;;  %2407 = vrcp.f32 %v1152_v49 }
 0x15c   :  { %2409 = vrcp.f32 %v1153_v51 }
 0x167   :  { %v2408_v52 = vpop.eup %2407 }
 0x168   :  { %v1164_v55 = vpack.c.bf16 %v2408_v52, %v2408_v52 }
 0x169   :  { %v2410_v53 = vpop.eup %2409 }
 0x16a   :  { %v1165_v54 = vpack.c.bf16 %v2410_v53, %v2410_v53 }
 0x16c   :  { %1596 = vmatprep.mubr.bf16.mxu0 %v1165_v54 }
 0x16d   :  { %1597 = vmatmul.mubr.bf16.vlgmr.msra.gmra.mxu0 %v1164_v55 }
 0x16e   :  { %2060 = vmatpush3.bf16.msra.mxu0 %v2388_v19 }
 0x16f   :  { %2061 = vmatprep.subr.bf16.mxu0 %v2389_v20 }
 0x172   :  { %2062 = vmatpush3.bf16.msra.mxu0 %v2390_v21 }
 0x173   :  { %2063 = vmatprep.subr.bf16.mxu0 %v2391_v22 }
 0x176   :  { %2064 = vmatpush3.bf16.msra.mxu0 %v2392_v23 }
 0x177   :  { %2065 = vmatprep.subr.bf16.mxu0 %v2393_v24 }
 0x17a   :  { %2066 = vmatpush3.bf16.msra.mxu0 %v2394_v25 }
 0x17b   :  { %2067 = vmatprep.subr.bf16.mxu0 %v2395_v28 }
 0x17e   :  { %2068 = vmatpush3.bf16.msra.mxu0 %v2396_v29 }
 0x17f   :  { %2069 = vmatprep.subr.bf16.mxu0 %v2397_v31 }
 0x182   :  { %2070 = vmatpush3.bf16.msra.mxu0 %v2398_v33 }
 0x183   :  { %v1092_v60 = vpop.f32.mrf.mxu0  ;;  %2071 = vmatprep.subr.bf16.mxu0 %v2399_v34 }
 0x184   :  { %v1133_v61 = vpop.f32.mrf.mxu1  ;;  %v1093_v62 = vadd.f32 %v1092_v60, %v327_v58 }
 0x185   :  { %v1094_v63 = vpop.f32.mrf.mxu0 }
 0x186   :  { %v1135_v0 = vpop.f32.mrf.mxu1  ;;  %v1134_v1 = vadd.f32 %v1133_v61, %v1093_v62  ;;  %v1095_v2 = vadd.f32 %v1094_v63, %v331_v59  ;;  %2072 = vmatpush3.bf16.msra.mxu0 %v2400_v35 }
 0x187   :  { %v1096_v3 = vpop.f32.mrf.mxu0  ;;  %2073 = vmatprep.subr.bf16.mxu0 %v2401_v36 }
 0x188   :  { %v1137_v4 = vpop.f32.mrf.mxu1  ;;  %v1976_v5 = vmul.f32 -1.442695, %v1134_v1  ;;  %v1136_v6 = vadd.f32 %v1135_v0, %v1095_v2 }
 0x189   :  { %v1097_v7 = vpop.f32.mrf.mxu0 }
 0x18a   :  { %v1138_v8 = vpop.f32.mrf.mxu1  ;;  %2411 = vpow2.f32 %v1976_v5  ;;  %v1977_v9 = vmul.f32 -1.442695, %v1136_v6  ;;  %2074 = vmatpush3.bf16.msra.mxu0 %v2402_v37 }
 0x18c   :  { %2413 = vpow2.f32 %v1977_v9 }
 0x197   :  { %v2412_v10 = vpop.eup %2411 }
 0x198   :  { %v1154_v11 = vadd.f32 1.0, %v2412_v10 }
 0x199   :  { %v2414_v12 = vpop.eup %2413 }
 0x19a   :  { %v1155_v13 = vadd.f32 1.0, %v2414_v12  ;;  %2415 = vrcp.f32 %v1154_v11 }
 0x19c   :  { %2417 = vrcp.f32 %v1155_v13 }
 0x1a7   :  { %v2416_v14 = vpop.eup %2415 }
 0x1a8   :  { %v1166_v17 = vpack.c.bf16 %v2416_v14, %v2416_v14 }
 0x1a9   :  { %v2418_v15 = vpop.eup %2417 }
 0x1aa   :  { %v1167_v16 = vpack.c.bf16 %v2418_v15, %v2418_v15 }
 0x1ac   :  { %1637 = vmatprep.mubr.bf16.mxu1 %v1167_v16 }
 0x1ad   :  { %1638 = vmatmul.mubr.bf16.vlgmr.msra.gmra.mxu1 %v1166_v17 }
 0x22d   :  { %v1598_v38 = vpop.f32.mrf.mxu0 }
 0x22e   :  { %v1599_v43 = vadd.f32 %v1598_v38, %v1237_v41 }
 0x22f   :  { %v1600_v39 = vpop.f32.mrf.mxu0 }
 0x230   :  { %v1601_v45 = vadd.f32 %v1600_v39, %v1241_v42 }
 0x231   :  { %v1602_v26 = vpop.f32.mrf.mxu0 }
 0x233   :  { %v1603_v27 = vpop.f32.mrf.mxu0 }
 0x26d   :  { %v1639_v44 = vpop.f32.mrf.mxu1 }
 0x26e   :  { %v1640_v46 = vadd.f32 %v1639_v44, %v1599_v43 }
 0x26f   :  { %v1641_v47 = vpop.f32.mrf.mxu1 }
 0x270   :  { %v1642_v49 = vadd.f32 %v1641_v47, %v1601_v45  ;;  %v1646_v50 = vmax.f32 %v1640_v46, 0.0 }
 0x271   :  { %v1643_v51 = vpop.f32.mrf.mxu1 }
 0x272   :  { %v1647_v52 = vmax.f32 %v1642_v49, 0.0  ;;  %v1648_v55 = vpack.c.bf16 %v1646_v50, %v1646_v50 }
 0x273   :  { %v1644_v53 = vpop.f32.mrf.mxu1 }
 0x274   :  { %v1649_v54 = vpack.c.bf16 %v1647_v52, %v1647_v52 }
 0x276   :  { %1817 = vmatprep.mubr.bf16.mxu0 %v1649_v54 }
 0x277   :  { %1818 = vmatmul.mubr.bf16.vlgmr.msra.gmra.mxu0 %v1648_v55 }
 0x337   :  { %v2075_v56 = vpop.f32.mrf.mxu0 }
 0x339   :  { %v2076_v30 = vpop.f32.mrf.mxu0 }
 0x33a   :  { %v2077_v32 = vadd.f32 %v2076_v30, %v2075_v56 }
 0x33b   :  { %v2078_v57 = vpop.f32.mrf.mxu0 }
 0x33c   :  { %v1820_v58 = vadd.f32 %v2077_v32, %v2042_v48 }
 0x33d   :  { %v2079_v59 = vpop.f32.mrf.mxu0 }
 0x33e   :  { %2419 = vtanh.f32 %v1820_v58 }
 0x34b   :  { %v2420_v60 = vpop.eup %2419 }
 0x34c   :  { %1826 = vst [vmem:[#allocation11] sm:$0xff] %v2420_v60 }
 0x34d   :  { %1831 = vsyncadd [#allocation4], 112  ;;  %s2565_s9 = smov [#allocation11]  }
 0x34e   :  { %s1832_s10 = sshll.u32 %s2565_s9, 4  ;;  %s1833_s10 = int_to_ptr.vmem [resolvable:$true] %s1832_s10 }
 0x34f   :  { %s2525_s11 = scalar_lea.vmem %s1833_s10, 16  ;;  %s2529_s12 = scalar_lea.vmem %s1833_s10, 128 }
 0x350   :  { %p2526_p11 = scmp.ne.s32.totalorder %s1833_s10, %s2525_s11  ;;  %p2530_p12 = scmp.lt.s32.totalorder %s1833_s10, %s1833_s10 }
 0x351   :  { %p2531_p13 = scmp.lt.s32.totalorder %s2529_s12, %s2525_s11 }
 0x353   :  { %p2532_p0 = por %p2531_p13, %p2530_p12 }
 0x355   :  { %p2533_p1 = pnand %p2532_p0, %p2526_p11 }
 0x357   :  { %2536 = shalt.err (!%p2533_p1)
}
 0x358   :  { %s2566_s6 = smov 1  }
 0x359   :  { %1838 = dma.vmem_to_hbm [thread:$0]  %s1833_s10, 16, %s2664_s7, [#allocation4], %s2555_s28, %s2555_s28, %s2566_s6  }
 0x35a   :  { %2551 = dma.done.wait [#allocation4], 128  }
 0x35b   :  { %2552 = vsyncadd [#allocation4], 4294967168 }
 0x35c   :  { %1842 = vsyncpa [#allocation3], 1 }
 0x35d   :  { %1843 = vsyncpa [#allocation6], 1 }
 0x35e   :  { %1844 = vsyncpa [#allocation9], 1 }
 0x35f   :  { %1845 = vsyncpa [#allocation4], 1 }

</bundles_post_ra>
